<compile_context>
chip_gen: v7x
topology: tpu7x:2x2x1
jax: 0.10.0
libtpu: 0.0.40
codegen_flags: <defaults>
</compile_context>

<pallas_src>
import jax
import jax.numpy as jnp
from jax.experimental import pallas as pl
from jax.experimental.pallas import tpu as pltpu

HIDDEN = 768        # hard-coded by nn.Linear(768, num_classes)
LANES = 128         # TPU lane width; the class dim is padded to this


def _round_up(x, m):
    return ((x + m - 1) // m) * m


def _vmem_capacity_bytes():
    """Per-TensorCore VMEM, with a v7x-safe fallback if the query fails."""
    try:
        return int(pltpu.get_tpu_info().vmem_capacity_bytes)
    except Exception:
        return 64 * 1024 * 1024


def _classifier_kernel(pooled_ref,   # VMEM (TB, S_max, H)  pooled BERT outputs
                       wsent_ref,    # VMEM (TB, S_max)     mask/num_sents weights
                       w_ref,        # VMEM (H, C_pad)      linear weight (padded)
                       b_ref,        # VMEM (1, C_pad)      linear bias   (padded)
                       out_ref):     # VMEM (TB, C_pad)
    pooled = pooled_ref[...]                                   # stays in input dtype
    w_sent = wsent_ref[...].astype(pooled.dtype)               # (TB, S_max)

    # Masked mean over valid sentences (mask and 1/n pre-fused into w_sent).
    prod = pooled * w_sent[:, :, None]                         # (TB, S_max, H)
    mean = jnp.sum(prod.astype(jnp.float32), axis=1)           # (TB, H) f32 accumulate

    # dropout: eval-mode identity.
    logits = jnp.dot(mean, w_ref[...],
                     preferred_element_type=jnp.float32) + b_ref[...]
    out_ref[...] = jnp.maximum(logits, 0.0)                    # ReLU


def bert_classifier_forward(pooled, num_sents, weight, bias):
    """pooled: (B, S_max, 768), num_sents: (B,) int, weight: (768, C) [= torch
       linear.weight.T], bias: (C,)  ->  (B, C) f32.
       Precondition (as in the PyTorch module): num_sents[i] >= 1."""
    B, S_max, H = pooled.shape
    assert H == HIDDEN
    C = weight.shape[1]
    elem = pooled.dtype.itemsize

    # ---- tiling decisions (S_max- and generation-aware) -------------------
    c_pad = _round_up(max(C, 1), LANES)                 # lane-dense output
    vmem_cap = _vmem_capacity_bytes()
    vmem_limit = min(int(vmem_cap * 0.75), 112 * 1024 * 1024)   # headroom for compiler
    tile_budget = int(vmem_limit * 0.6)                 # double-buffered pooled tile
    bytes_per_row = S_max * HIDDEN * elem
    tb = tile_budget // (2 * bytes_per_row)
    tb = int(max(8, min(1024, (tb // 8) * 8)))          # multiple of 8 rows
    if B > 16:
        # Prefer >= 2 tiles so the "parallel" axis shards across 2 TCs (v7x)
        # and the input DMA pipeline has something to overlap.
        tb = min(tb, _round_up(pl.cdiv(B, 2), 8))
    if tb >= B:
        tb = B                                          # single full-extent tile
    grid = pl.cdiv(B, tb)                               # ragged last tile is masked

    # ---- small precomputed operands (the big pooled tensor is NOT copied) --
    ns = jnp.asarray(num_sents, jnp.int32)
    inv_n = 1.0 / jnp.maximum(ns.astype(jnp.float32), 1.0)      # guards n == 0
    mask = jnp.arange(S_max, dtype=jnp.int32)[None, :] < ns[:, None]
    w_sent = (mask.astype(jnp.float32) * inv_n[:, None]).astype(pooled.dtype)  # (B, S_max)

    w_p = jnp.zeros((H, c_pad), jnp.float32).at[:, :C].set(weight.astype(jnp.float32))
    b_p = jnp.zeros((1, c_pad), jnp.float32).at[0, :C].set(bias.astype(jnp.float32))

    grid_spec = pltpu.PrefetchScalarGridSpec(
        num_scalar_prefetch=0,
        grid=(grid,),
        in_specs=[
            pl.BlockSpec((tb, S_max, H), lambda i: (i, 0, 0)),   # pooled tile (streamed)
            pl.BlockSpec((tb, S_max), lambda i: (i, 0)),         # per-sentence weights
            pl.BlockSpec((H, c_pad), lambda i: (0, 0)),          # weight (resident)
            pl.BlockSpec((1, c_pad), lambda i: (0, 0)),          # bias   (resident)
        ],
        out_specs=pl.BlockSpec((tb, c_pad), lambda i: (i, 0)),
    )

    out = pl.pallas_call(
        _classifier_kernel,
        out_shape=jax.ShapeDtypeStruct((B, c_pad), jnp.float32),
        grid_spec=grid_spec,
        compiler_params=pltpu.CompilerParams(
            dimension_semantics=("parallel",),        # tiles shard across TCs (v7x)
            vmem_limit_bytes=vmem_limit),
    )(pooled, w_sent, w_p, b_p)

    return out[:, :C]


def _reference(pooled, num_sents, weight, bias):
    B, S_max, H = pooled.shape
    mask = (jnp.arange(S_max)[None, :] < num_sents[:, None]).astype(jnp.float32)
    mean = (jnp.sum(pooled * mask[:, :, None], axis=1)
            / num_sents[:, None].astype(jnp.float32))
    return jnp.maximum(mean @ weight + bias, 0.0)


if __name__ == "__main__":
    key = jax.random.PRNGKey(0)
    B, S_max, num_classes = 4, 8, 3

    k_pool, k_w, k_b = jax.random.split(key, 3)

    # Synthetic stand-in for bert_model(...)[1] pooled outputs per sentence.
    pooled = jax.random.normal(k_pool, (B, S_max, HIDDEN), dtype=jnp.float32)
    num_sents = jnp.array([5, 8, 1, 3], dtype=jnp.int32)   # valid sentences per doc

    # Deterministic parameters for nn.Linear(768, num_classes), stored as (768, C).
    weight = jax.random.normal(k_w, (HIDDEN, num_classes), dtype=jnp.float32) * 0.02
    bias = jax.random.normal(k_b, (num_classes,), dtype=jnp.float32) * 0.02

    out = bert_classifier_forward(pooled, num_sents, weight, bias)
    out = jax.block_until_ready(out)

    ref = _reference(pooled, num_sents, weight, bias)
    assert out.shape == (B, num_classes)
    assert jnp.allclose(out, ref, atol=1e-4, rtol=1e-4), "mismatch vs reference"

    print("KERNEL_OK")
</pallas_src>

<mosaic_0001>
module attributes {stable_mosaic.version = 11 : i64} {
  func.func @_classifier_kernel(%arg0: i32, %arg1: memref<4x8x768xf32, #tpu.memory_space<vmem>>, %arg2: memref<4x8xf32, #tpu.memory_space<vmem>>, %arg3: memref<768x128xf32, #tpu.memory_space<vmem>>, %arg4: memref<1x128xf32, #tpu.memory_space<vmem>>, %arg5: memref<4x128xf32, #tpu.memory_space<vmem>>) attributes {dimension_semantics = [#tpu.dimension_semantics<parallel>], iteration_bounds = array<i64: 1>, scalar_prefetch = 0 : i64, scratch_operands = 0 : i64, tpu.core_type = #tpu.core_type<tc>, window_params = [{transform_indices = @transform_0, window_bounds = array<i64: 4, 8, 768>}, {transform_indices = @transform_1, window_bounds = array<i64: 4, 8>}, {pipeline_mode = #tpu.pipeline_mode<synchronous>, transform_indices = @transform_2, window_bounds = array<i64: 768, 128>}, {pipeline_mode = #tpu.pipeline_mode<synchronous>, transform_indices = @transform_3, window_bounds = array<i64: 1, 128>}, {transform_indices = @transform_4, window_bounds = array<i64: 4, 128>}]} {
    %c0 = arith.constant 0 : index
    %c0_0 = arith.constant 0 : index
    %c0_1 = arith.constant 0 : index
    %0 = vector.load %arg1[%c0, %c0_0, %c0_1] : memref<4x8x768xf32, #tpu.memory_space<vmem>>, vector<4x8x768xf32>
    %c0_2 = arith.constant 0 : index
    %c0_3 = arith.constant 0 : index
    %1 = vector.load %arg2[%c0_2, %c0_3] : memref<4x8xf32, #tpu.memory_space<vmem>>, vector<4x8xf32>
    %2 = vector.shape_cast %1 : vector<4x8xf32> to vector<4x8x1xf32>
    %3 = vector.broadcast %2 : vector<4x8x1xf32> to vector<4x8x768xf32>
    %4 = arith.mulf %0, %3 : vector<4x8x768xf32>
    %cst = arith.constant dense<0.000000e+00> : vector<4x768xf32>
    %5 = vector.multi_reduction <add>, %4, %cst [1] : vector<4x8x768xf32> to vector<4x768xf32>
    %c0_4 = arith.constant 0 : index
    %c0_5 = arith.constant 0 : index
    %6 = vector.load %arg3[%c0_4, %c0_5] : memref<768x128xf32, #tpu.memory_space<vmem>>, vector<768x128xf32>
    %cst_6 = arith.constant dense<0.000000e+00> : vector<4x128xf32>
    %7 = tpu.matmul %5, %6, %cst_6 {dimension_numbers = #tpu.dot_dimension_numbers<[1], [0], [0], [1], [0, 0, 1, 1], [], []>} : vector<4x768xf32>, vector<768x128xf32>, vector<4x128xf32> -> vector<4x128xf32>
    %c0_7 = arith.constant 0 : index
    %c0_8 = arith.constant 0 : index
    %8 = vector.load %arg4[%c0_7, %c0_8] : memref<1x128xf32, #tpu.memory_space<vmem>>, vector<1x128xf32>
    %9 = vector.broadcast %8 : vector<1x128xf32> to vector<4x128xf32>
    %10 = arith.addf %7, %9 : vector<4x128xf32>
    %cst_9 = arith.constant 0.000000e+00 : f32
    %11 = vector.broadcast %cst_9 : f32 to vector<4x128xf32>
    %12 = arith.maximumf %10, %11 : vector<4x128xf32>
    %c0_10 = arith.constant 0 : index
    %c0_11 = arith.constant 0 : index
    %13 = vector.load %arg5[%c0_10, %c0_11] : memref<4x128xf32, #tpu.memory_space<vmem>>, vector<4x128xf32>
    tpu.vector_store %arg5[%c0_10, %c0_11], %12 {strides = array<i32>} : memref<4x128xf32, #tpu.memory_space<vmem>>, vector<4x128xf32>,
    return
  }
  func.func @transform_0(%arg0: i32) -> (i32, i32, i32) {
    %c0_i32 = arith.constant 0 : i32
    %c0_i32_0 = arith.constant 0 : i32
    %c0_i32_1 = arith.constant 0 : i32
    return %arg0, %c0_i32, %c0_i32_0 : i32, i32, i32
  }
  func.func @transform_1(%arg0: i32) -> (i32, i32) {
    %c0_i32 = arith.constant 0 : i32
    %c0_i32_0 = arith.constant 0 : i32
    return %arg0, %c0_i32 : i32, i32
  }
  func.func @transform_2(%arg0: i32) -> (i32, i32) {
    %c0_i32 = arith.constant 0 : i32
    %c0_i32_0 = arith.constant 0 : i32
    %c0_i32_1 = arith.constant 0 : i32
    return %c0_i32, %c0_i32_0 : i32, i32
  }
  func.func @transform_3(%arg0: i32) -> (i32, i32) {
    %c0_i32 = arith.constant 0 : i32
    %c0_i32_0 = arith.constant 0 : i32
    %c0_i32_1 = arith.constant 0 : i32
    return %c0_i32, %c0_i32_0 : i32, i32
  }
  func.func @transform_4(%arg0: i32) -> (i32, i32) {
    %c0_i32 = arith.constant 0 : i32
    %c0_i32_0 = arith.constant 0 : i32
    return %arg0, %c0_i32 : i32, i32
  }
}

</mosaic_0001>

<bundles_post_ra>
// kernel: tpu_custom_call.1
= control target key start
LH: loop header
LB: loop body
LE: loop exit
PB: predicated region body
PF: predicated region fallthrough
CT: control target
= control target key end

     0   :  { %9 = vsyncpa [#allocation3], 0  ;;  %s1185_s0 = inlined_call_operand.hbm [shape: f32[4,8,768], index: 0, kind: input, shape index: {}]   ;;  %s1186_s1 = inlined_call_operand.hbm [shape: f32[4,8], index: 1, kind: input, shape index: {}]   ;;  %s1187_s2 = inlined_call_operand.hbm [shape: f32[768,128], index: 2, kind: input, shape index: {}]   ;;  %s1188_s3 = inlined_call_operand.vmem [shape: f32[1,128], index: 3, kind: input, shape index: {}]   ;;  %s1189_s4 = inlined_call_operand.hbm [shape: f32[4,128], index: 4, kind: output, shape index: {}]  }
   0x1   :  { %10 = vsyncpa [#allocation6], 0 }
   0x2   :  { %11 = vsyncpa [#allocation4], 0  ;;  %s964_s15 = smov [#allocation5]   ;;  %s965_s17 = smov [#allocation2]  }
   0x3   :  { %s30_s16 = sshll.u32 %s964_s15, 4  ;;  %s17_s18 = sshll.u32 %s965_s17, 4  ;;  %s31_s16 = int_to_ptr.vmem [resolvable:$true] %s30_s16  ;;  %s997_s18 = int_to_ptr.vmem [resolvable:$true] %s17_s18 }
   0x4   :  { %s870_s21 = scalar_lea.hbm %s1186_s1, 64 }
   0x5   :  { %p871_p0 = scmp.ne.s32.totalorder %s1186_s1, %s870_s21  ;;  %p874_p1 = scmp.lt.u32.totalorder %s870_s21, %s1186_s1 }
   0x7   :  { %p876_p2 = pnand %p874_p1, %p871_p0 }
   0x9   :  { %879 = shalt.err (!%p876_p2)
}
   0xa   :  { %s880_s26 = scalar_lea.vmem %s31_s16, 64  ;;  %p885_p4 = scmp.lt.s32.totalorder %s31_s16, %s31_s16 }
   0xb   :  { %p881_p3 = scmp.ne.s32.totalorder %s31_s16, %s880_s26  ;;  %p886_p5 = scmp.lt.s32.totalorder %s880_s26, %s880_s26 }
   0xd   :  { %p887_p6 = por %p886_p5, %p885_p4 }
   0xf   :  { %p888_p7 = pnand %p887_p6, %p881_p3 }
  0x11   :  { %891 = shalt.err (!%p888_p7)
}
  0x12   :  { %33 = dma.hbm_to_vmem [thread:$0]  %s1186_s1, 64, %s31_s16, [#allocation6]  }
  0x13   :  { %s892_s5 = scalar_lea.hbm %s1185_s0, 3072 }
  0x14   :  { %p893_p8 = scmp.ne.s32.totalorder %s1185_s0, %s892_s5  ;;  %p896_p9 = scmp.lt.u32.totalorder %s892_s5, %s1185_s0 }
  0x16   :  { %p898_p10 = pnand %p896_p9, %p893_p8 }
  0x18   :  { %901 = shalt.err (!%p898_p10)
}
  0x19   :  { %s902_s10 = scalar_lea.vmem %s997_s18, 3072  ;;  %p907_p12 = scmp.lt.s32.totalorder %s997_s18, %s997_s18 }
  0x1a   :  { %p903_p11 = scmp.ne.s32.totalorder %s997_s18, %s902_s10  ;;  %p908_p13 = scmp.lt.s32.totalorder %s902_s10, %s902_s10 }
  0x1c   :  { %p909_p0 = por %p908_p13, %p907_p12 }
  0x1e   :  { %p910_p1 = pnand %p909_p0, %p903_p11 }
  0x20   :  { %913 = shalt.err (!%p910_p1)
}
  0x21   :  { %s966_s1 = smov 768   ;;  %s967_s11 = smov 48  }
  0x22   :  { %23 = dma.hbm_to_vmem [thread:$0]  %s1185_s0, 3072, %s997_s18, [#allocation3], %s966_s1, %s966_s1, %s967_s11  }
  0x23   :  { %s968_s14 = smov [#allocation7]   ;;  %s914_s19 = scalar_lea.hbm %s1187_s2, 12288 }
  0x24   :  { %s39_s15 = sshll.u32 %s968_s14, 4  ;;  %p915_p2 = scmp.ne.s32.totalorder %s1187_s2, %s914_s19  ;;  %s40_s15 = int_to_ptr.vmem [resolvable:$true] %s39_s15 }
  0x25   :  { %p918_p3 = scmp.lt.u32.totalorder %s914_s19, %s1187_s2 }
  0x27   :  { %p920_p4 = pnand %p918_p3, %p915_p2 }
  0x29   :  { %923 = shalt.err (!%p920_p4)
}
  0x2a   :  { %s924_s24 = scalar_lea.vmem %s40_s15, 12288  ;;  %p929_p6 = scmp.lt.s32.totalorder %s40_s15, %s40_s15 }
  0x2b   :  { %p925_p5 = scmp.ne.s32.totalorder %s40_s15, %s924_s24  ;;  %p930_p7 = scmp.lt.s32.totalorder %s924_s24, %s924_s24 }
  0x2d   :  { %p931_p8 = por %p930_p7, %p929_p6 }
  0x2f   :  { %p932_p9 = pnand %p931_p8, %p925_p5 }
  0x31   :  { %935 = shalt.err (!%p932_p9)
}
  0x32   :  { %s969_s0 = smov 128   ;;  %s970_s18 = smov 8  }
  0x33   :  { %45 = dma.hbm_to_vmem [thread:$0]  %s1187_s2, 12288, %s40_s15, [#allocation6], %s969_s0, %s969_s0, %s970_s18  }
  0x34   :  { %958 = dma.done.wait [#allocation3], 3072  }
  0x35   :  { %959 = vsyncadd [#allocation3], 4294964224 }
  0x36   :  { %960 = dma.done.wait [#allocation6], 12352  }
  0x37   :  { %961 = vsyncadd [#allocation6], 4294954944  ;;  %v82_v0 = vlaneseq  ;;  %v81_v6 = vld [vmem:[#allocation5] sm:$0xf]  ;;  %v294_v7 = vld [vmem:[#allocation7 + $0x80] sm:$0xff]  ;;  %vm405_vm0 = vcmask 1041409  }
  0x38   :  { %v295_v8 = vld [vmem:[#allocation7 + $0x88] sm:$0xff]  ;;  %v278_v11 = vld [vmem:[#allocation7] sm:$0xff]  ;;  %v296_v23 = vld [vmem:[#allocation7 + $0x90] sm:$0xff]  ;;  %vm407_vm1 = vcmask 1042434   ;;  %vm409_vm2 = vcmask 1043459   ;;  %s971_s28 = smov [#allocation8]  }
  0x39   :  { %v83_v1 = vshrl.u32 %v82_v0, 7  ;;  %v279_v12 = vld [vmem:[#allocation7 + $0x8] sm:$0xff]  ;;  %v326_v13 = vld [vmem:[#allocation7 + $0x180] sm:$0xff]  ;;  %v766_v15 = vpack.c.bf16 %v295_v8, %v294_v7  ;;  %v297_v24 = vld [vmem:[#allocation7 + $0x98] sm:$0xff]  ;;  %s650_s29 = sshll.u32 %s971_s28, 4  ;;  %s651_s29 = int_to_ptr.vmem [resolvable:$true] %s650_s29 }
  0x3a   :  { %v768_v16 = vpack.c.bf16 %v279_v12, %v278_v11  ;;  %v327_v17 = vld [vmem:[#allocation7 + $0x188] sm:$0xff]  ;;  %v310_v18 = vld [vmem:[#allocation7 + $0x100] sm:$0xff]  ;;  %v280_v25 = vld [vmem:[#allocation7 + $0x10] sm:$0xff]  ;;  %v770_v26 = vpack.c.bf16 %v297_v24, %v296_v23  ;;  %s936_s30 = scalar_lea.vmem %s651_s29, 64  ;;  %p941_p11 = scmp.lt.s32.totalorder %s651_s29, %s651_s29 }
  0x3b   :  { %v98_v2 = vsub.s32 2, %v83_v1  ;;  %v84_v3 = vsub.s32 0, %v83_v1  ;;  %v105_v4 = vsub.s32 3, %v83_v1  ;;  %v91_v5 = vsub.s32 1, %v83_v1  ;;  %v311_v19 = vld [vmem:[#allocation7 + $0x108] sm:$0xff]  ;;  %767 = vmatprep.subr.bf16.mxu0 %v766_v15  ;;  %v281_v27 = vld [vmem:[#allocation7 + $0x18] sm:$0xff]  ;;  %p937_p10 = scmp.ne.s32.totalorder %s651_s29, %s936_s30  ;;  %p942_p12 = scmp.lt.s32.totalorder %s936_s30, %s936_s30 }
  0x3c   :  { %v798_v21 = vpack.c.bf16 %v327_v17, %v326_v13  ;;  %v800_v22 = vpack.c.bf16 %v311_v19, %v310_v18  ;;  %v328_v28 = vld [vmem:[#allocation7 + $0x190] sm:$0xff]  ;;  %v329_v29 = vld [vmem:[#allocation7 + $0x198] sm:$0xff]  ;;  %769 = vmatpush3.bf16.msra.mxu0 %v768_v16  ;;  %v772_v30 = vpack.c.bf16 %v281_v27, %v280_v25  ;;  %v298_v34 = vld [vmem:[#allocation7 + $0xa0] sm:$0xff] }
  0x3d   :  { %v99_v9 = vrot.slane %v81_v6, %v98_v2  ;;  %v85_v10 = vrot.slane %v81_v6, %v84_v3  ;;  %v106_v14 = vrot.slane %v81_v6, %v105_v4  ;;  %v92_v20 = vrot.slane %v81_v6, %v91_v5  ;;  %v312_v32 = vld [vmem:[#allocation7 + $0x110] sm:$0xff]  ;;  %v313_v33 = vld [vmem:[#allocation7 + $0x118] sm:$0xff]  ;;  %771 = vmatprep.subr.bf16.mxu0 %v770_v26  ;;  %v299_v36 = vld [vmem:[#allocation7 + $0xa8] sm:$0xff]  ;;  %p943_p13 = por %p942_p12, %p941_p11 }
  0x3e   :  { %799 = vmatprep.subr.bf16.mxu1 %v798_v21  ;;  %v802_v31 = vpack.c.bf16 %v329_v29, %v328_v28  ;;  %v804_v35 = vpack.c.bf16 %v313_v33, %v312_v32  ;;  %v282_v37 = vld [vmem:[#allocation7 + $0x20] sm:$0xff]  ;;  %v283_v38 = vld [vmem:[#allocation7 + $0x28] sm:$0xff]  ;;  %v774_v39 = vpack.c.bf16 %v299_v36, %v298_v34  ;;  %v300_v47 = vld [vmem:[#allocation7 + $0xb0] sm:$0xff] }
  0x3f   :  { %101 = vbcast.lane.b32.xlu1 %v99_v9, 256  ;;  %87 = vbcast.lane.b32.xlu0 %v85_v10, 256  ;;  %v330_v40 = vld [vmem:[#allocation7 + $0x1a0] sm:$0xff]  ;;  %v331_v41 = vld [vmem:[#allocation7 + $0x1a8] sm:$0xff]  ;;  %v776_v45 = vpack.c.bf16 %v283_v38, %v282_v37  ;;  %v301_v48 = vld [vmem:[#allocation7 + $0xb8] sm:$0xff]  ;;  %p944_p0 = pnand %p943_p13, %p937_p10 }
  0x40   :  { %801 = vmatpush3.bf16.msra.mxu1 %v800_v22  ;;  %v314_v42 = vld [vmem:[#allocation7 + $0x120] sm:$0xff]  ;;  %v806_v43 = vpack.c.bf16 %v331_v41, %v330_v40  ;;  %v315_v44 = vld [vmem:[#allocation7 + $0x128] sm:$0xff]  ;;  %773 = vmatpush3.bf16.msra.mxu0 %v772_v30  ;;  %v778_v49 = vpack.c.bf16 %v301_v48, %v300_v47  ;;  %v284_v50 = vld [vmem:[#allocation7 + $0x30] sm:$0xff] }
  0x41   :  { %803 = vmatprep.subr.bf16.mxu1 %v802_v31  ;;  %775 = vmatprep.subr.bf16.mxu0 %v774_v39  ;;  %v808_v46 = vpack.c.bf16 %v315_v44, %v314_v42  ;;  %v285_v51 = vld [vmem:[#allocation7 + $0x38] sm:$0xff]  ;;  %v332_v52 = vld [vmem:[#allocation7 + $0x1b0] sm:$0xff]  ;;  %v302_v59 = vld [vmem:[#allocation7 + $0xc0] sm:$0xff] }
  0x42   :  { %v780_v53 = vpack.c.bf16 %v285_v51, %v284_v50  ;;  %v333_v54 = vld [vmem:[#allocation7 + $0x1b8] sm:$0xff]  ;;  %v316_v55 = vld [vmem:[#allocation7 + $0x130] sm:$0xff]  ;;  %v303_v60 = vld [vmem:[#allocation7 + $0xc8] sm:$0xff] }
  0x43   :  { %108 = vbcast.lane.b32.xlu1 %v106_v14, 256  ;;  %94 = vbcast.lane.b32.xlu0 %v92_v20, 256  ;;  %v317_v56 = vld [vmem:[#allocation7 + $0x138] sm:$0xff]  ;;  %v810_v57 = vpack.c.bf16 %v333_v54, %v332_v52  ;;  %v286_v61 = vld [vmem:[#allocation7 + $0x40] sm:$0xff]  ;;  %v782_v62 = vpack.c.bf16 %v303_v60, %v302_v59  ;;  %v287_v63 = vld [vmem:[#allocation7 + $0x48] sm:$0xff] }
  0x44   :  { %805 = vmatpush3.bf16.msra.mxu1 %v804_v35  ;;  %777 = vmatpush3.bf16.msra.mxu0 %v776_v45  ;;  %v812_v58 = vpack.c.bf16 %v317_v56, %v316_v55  ;;  %v334_v0 = vld [vmem:[#allocation7 + $0x1c0] sm:$0xff]  ;;  %v335_v1 = vld [vmem:[#allocation7 + $0x1c8] sm:$0xff]  ;;  %v784_v2 = vpack.c.bf16 %v287_v63, %v286_v61  ;;  %v304_v6 = vld [vmem:[#allocation7 + $0xd0] sm:$0xff] }
  0x45   :  { %807 = vmatprep.subr.bf16.mxu1 %v806_v43  ;;  %779 = vmatprep.subr.bf16.mxu0 %v778_v49  ;;  %v814_v3 = vpack.c.bf16 %v335_v1, %v334_v0  ;;  %v318_v4 = vld [vmem:[#allocation7 + $0x140] sm:$0xff]  ;;  %v319_v5 = vld [vmem:[#allocation7 + $0x148] sm:$0xff]  ;;  %v305_v8 = vld [vmem:[#allocation7 + $0xd8] sm:$0xff] }
  0x46   :  { %v816_v7 = vpack.c.bf16 %v319_v5, %v318_v4  ;;  %v288_v9 = vld [vmem:[#allocation7 + $0x50] sm:$0xff]  ;;  %v289_v10 = vld [vmem:[#allocation7 + $0x58] sm:$0xff]  ;;  %v786_v11 = vpack.c.bf16 %v305_v8, %v304_v6  ;;  %v306_v18 = vld [vmem:[#allocation7 + $0xe0] sm:$0xff] }
  0x47   :  { %v788_v12 = vpack.c.bf16 %v289_v10, %v288_v9  ;;  %v336_v13 = vld [vmem:[#allocation7 + $0x1d0] sm:$0xff]  ;;  %v337_v14 = vld [vmem:[#allocation7 + $0x1d8] sm:$0xff]  ;;  %v307_v19 = vld [vmem:[#allocation7 + $0xe8] sm:$0xff] }
  0x48   :  { %809 = vmatpush3.bf16.msra.mxu1 %v808_v46  ;;  %781 = vmatpush3.bf16.msra.mxu0 %v780_v53  ;;  %v320_v15 = vld [vmem:[#allocation7 + $0x150] sm:$0xff]  ;;  %v818_v16 = vpack.c.bf16 %v337_v14, %v336_v13  ;;  %v321_v17 = vld [vmem:[#allocation7 + $0x158] sm:$0xff]  ;;  %v790_v21 = vpack.c.bf16 %v307_v19, %v306_v18  ;;  %v290_v22 = vld [vmem:[#allocation7 + $0x60] sm:$0xff] }
  0x49   :  { %811 = vmatprep.subr.bf16.mxu1 %v810_v57  ;;  %783 = vmatprep.subr.bf16.mxu0 %v782_v62  ;;  %v820_v20 = vpack.c.bf16 %v321_v17, %v320_v15  ;;  %v291_v23 = vld [vmem:[#allocation7 + $0x68] sm:$0xff]  ;;  %v338_v24 = vld [vmem:[#allocation7 + $0x1e0] sm:$0xff]  ;;  %v308_v30 = vld [vmem:[#allocation7 + $0xf0] sm:$0xff] }
  0x4a   :  { %v339_v25 = vld [vmem:[#allocation7 + $0x1e8] sm:$0xff]  ;;  %v322_v26 = vld [vmem:[#allocation7 + $0x160] sm:$0xff]  ;;  %v792_v28 = vpack.c.bf16 %v291_v23, %v290_v22  ;;  %v309_v31 = vld [vmem:[#allocation7 + $0xf8] sm:$0xff] }
  0x4b   :  { %v323_v27 = vld [vmem:[#allocation7 + $0x168] sm:$0xff]  ;;  %v822_v29 = vpack.c.bf16 %v339_v25, %v338_v24  ;;  %v292_v32 = vld [vmem:[#allocation7 + $0x70] sm:$0xff]  ;;  %v794_v34 = vpack.c.bf16 %v309_v31, %v308_v30  ;;  %v293_v35 = vld [vmem:[#allocation7 + $0x78] sm:$0xff] }
  0x4c   :  { %813 = vmatpush3.bf16.msra.mxu1 %v812_v58  ;;  %785 = vmatpush3.bf16.msra.mxu0 %v784_v2  ;;  %v824_v33 = vpack.c.bf16 %v323_v27, %v322_v26  ;;  %v340_v36 = vld [vmem:[#allocation7 + $0x1f0] sm:$0xff]  ;;  %v341_v37 = vld [vmem:[#allocation7 + $0x1f8] sm:$0xff]  ;;  %v358_v41 = vld [vmem:[#allocation7 + $0x280] sm:$0xff]  ;;  %v796_v43 = vpack.c.bf16 %v293_v35, %v292_v32 }
  0x4d   :  { %815 = vmatprep.subr.bf16.mxu1 %v814_v3  ;;  %787 = vmatprep.subr.bf16.mxu0 %v786_v11  ;;  %v826_v38 = vpack.c.bf16 %v341_v37, %v340_v36  ;;  %v324_v39 = vld [vmem:[#allocation7 + $0x170] sm:$0xff]  ;;  %v325_v40 = vld [vmem:[#allocation7 + $0x178] sm:$0xff]  ;;  %v359_v42 = vld [vmem:[#allocation7 + $0x288] sm:$0xff] }
  0x4e   :  { %v828_v44 = vpack.c.bf16 %v325_v40, %v324_v39  ;;  %v830_v45 = vpack.c.bf16 %v359_v42, %v358_v41  ;;  %v57_v46 = vld [vmem:[#allocation2] sm:$0xff]  ;;  %v71_v49 = vld [vmem:[#allocation2 + $0x70] sm:$0xff]  ;;  %v74_v52 = vld [vmem:[#allocation2 + $0x88] sm:$0xff] }
  0x4f   :  { %v69_v48 = vld [vmem:[#allocation2 + $0x60] sm:$0xff]  ;;  %v59_v51 = vld [vmem:[#allocation2 + $0x10] sm:$0xff]  ;;  %v58_v53 = vld [vmem:[#allocation2 + $0x8] sm:$0xff] }
  0x50   :  { %817 = vmatpush3.bf16.msra.mxu1 %v816_v7  ;;  %789 = vmatpush3.bf16.msra.mxu0 %v788_v12  ;;  %v62_v54 = vld [vmem:[#allocation2 + $0x28] sm:$0xff]  ;;  %v60_v55 = vld [vmem:[#allocation2 + $0x18] sm:$0xff]  ;;  %v75_v9 = vld [vmem:[#allocation2 + $0x90] sm:$0xff] }
  0x51   :  { %819 = vmatprep.subr.bf16.mxu1 %v818_v16  ;;  %791 = vmatprep.subr.bf16.mxu0 %v790_v21  ;;  %v70_v57 = vld [vmem:[#allocation2 + $0x68] sm:$0xff]  ;;  %v72_v62 = vld [vmem:[#allocation2 + $0x78] sm:$0xff]  ;;  %v63_v12 = vld [vmem:[#allocation2 + $0x30] sm:$0xff] }
  0x52   :  { %v1049_v60 = vld [vmem:[#allocation7 + $0x200] sm:$0xff]  ;;  %v1051_v61 = vld [vmem:[#allocation7 + $0x208] sm:$0xff]  ;;  %v1061_v3 = vld [vmem:[#allocation7 + $0x290] sm:$0xff] }
  0x53   :  { %v1063_v4 = vld [vmem:[#allocation7 + $0x298] sm:$0xff]  ;;  %v832_v13 = vpack.c.bf16 %v1051_v61, %v1049_v60  ;;  %v66_v25 = vld [vmem:[#allocation2 + $0x48] sm:$0xff]  ;;  %v364_v60 = vld [vmem:[#allocation7 + $0x2b0] sm:$0xff] }
  0x54   :  { %821 = vmatpush3.bf16.msra.mxu1 %v820_v20  ;;  %793 = vmatpush3.bf16.msra.mxu0 %v792_v28  ;;  %v76_v10 = vld [vmem:[#allocation2 + $0x98] sm:$0xff]  ;;  %v77_v17 = vld [vmem:[#allocation2 + $0xa0] sm:$0xff]  ;;  %v834_v20 = vpack.c.bf16 %v1063_v4, %v1061_v3 }
  0x55   :  { %823 = vmatprep.subr.bf16.mxu1 %v822_v29  ;;  %795 = vmatprep.subr.bf16.mxu0 %v794_v34  ;;  %v64_v18 = vld [vmem:[#allocation2 + $0x38] sm:$0xff]  ;;  %v65_v19 = vld [vmem:[#allocation2 + $0x40] sm:$0xff]  ;;  %v78_v29 = vld [vmem:[#allocation2 + $0xa8] sm:$0xff] }
  0x56   :  { %v68_v26 = vld [vmem:[#allocation2 + $0x58] sm:$0xff] }
  0x57   :  { %v365_v61 = vld [vmem:[#allocation7 + $0x2b8] sm:$0xff] }
  0x58   :  { %825 = vmatpush3.bf16.msra.mxu1 %v824_v33  ;;  %797 = vmatpush3.bf16.msra.mxu0 %v796_v43  ;;  %v80_v33 = vld [vmem:[#allocation2 + $0xb8] sm:$0xff] }
  0x59   :  { %827 = vmatprep.subr.bf16.mxu1 %v826_v38  ;;  %831 = vmatprep.subr.bf16.mxu0 %v830_v45 }
  0x5c   :  { %829 = vmatpush3.bf16.msra.mxu1 %v828_v44 }
  0xb1   :  { %v1040_v47 = vpop.permute.xlu1 %101  ;;  %v1042_v50 = vpop.permute.xlu0 %87 }
  0xb2   :  { %v110_v56 = vmul.f32 %v1042_v50, %v57_v46  ;;  %v1046_v58 = vmul.f32 %v1040_v47, %v69_v48  ;;  %v112_v59 = vmul.f32 %v1042_v50, %v59_v51  ;;  %v1054_v63 = vmul.f32 %v1040_v47, %v71_v49 }
  0xb3   :  { %v1057_v0 = vmul.f32 %v1040_v47, %v74_v52  ;;  %v111_v1 = vmul.f32 %v1042_v50, %v58_v53  ;;  %v115_v2 = vmul.f32 %v1042_v50, %v62_v54  ;;  %v1066_v5 = vmul.f32 %v1042_v50, %v60_v55 }
  0xb4   :  { %v134_v6 = vrot.slane %v110_v56, 4  ;;  %v146_v7 = vrot.slane %v112_v59, 4  ;;  %v123_v14 = vmul.f32 %v1040_v47, %v70_v57  ;;  %v1076_v15 = vmul.f32 %v1040_v47, %v72_v62 }
  0xb5   :  { %v1068_v8 = vpop.permute.xlu1 %108  ;;  %v1070_v11 = vpop.permute.xlu0 %94  ;;  %v164_v16 = vrot.slane %v115_v2, 4  ;;  %v206_v21 = vrot.slane %v1046_v58, 4  ;;  %v218_v22 = vrot.slane %v1054_v63, 4  ;;  %v236_v23 = vrot.slane %v1057_v0, 4 }
  0xb6   :  { %v140_v24 = vrot.slane %v111_v1, 4  ;;  %v1083_v27 = vadd.f32 %v134_v6, %v110_v56  ;;  %v152_v28 = vrot.slane %v1066_v5, 4  ;;  %v1087_v30 = vmul.f32 %v1068_v8, %v75_v9 }
  0xb7   :  { %v116_v31 = vmul.f32 %v1070_v11, %v63_v12  ;;  %v1090_v32 = vadd.f32 %v146_v7, %v112_v59  ;;  %v129_v34 = vmul.f32 %v1068_v8, %v76_v10  ;;  %v117_v35 = vmul.f32 %v1070_v11, %v64_v18 }
  0xb8   :  { %v118_v36 = vmul.f32 %v1070_v11, %v65_v19  ;;  %v1095_v37 = vadd.f32 %v164_v16, %v115_v2  ;;  %v1098_v38 = vmul.f32 %v1068_v8, %v77_v17  ;;  %v119_v39 = vmul.f32 %v1070_v11, %v66_v25 }
  0xb9   :  { %v121_v40 = vmul.f32 %v1070_v11, %v68_v26  ;;  %v131_v41 = vmul.f32 %v1068_v8, %v78_v29  ;;  %v170_v42 = vrot.slane %v116_v31, 4  ;;  %v176_v43 = vrot.slane %v117_v35, 4 }
  0xba   :  { %v182_v44 = vrot.slane %v118_v36, 4  ;;  %v1104_v45 = vmul.f32 %v1068_v8, %v80_v33  ;;  %v188_v46 = vrot.slane %v119_v39, 4  ;;  %v141_v49 = vadd.f32 %v140_v24, %v111_v1 }
  0xbb   :  { %v200_v48 = vrot.slane %v121_v40, 4  ;;  %v171_v51 = vadd.f32 %v170_v42, %v116_v31  ;;  %v177_v52 = vadd.f32 %v176_v43, %v117_v35  ;;  %v212_v54 = vrot.slane %v123_v14, 4 }
  0xbc   :  { %v183_v53 = vadd.f32 %v182_v44, %v118_v36  ;;  %v242_v55 = vrot.slane %v1087_v30, 4  ;;  %v189_v56 = vadd.f32 %v188_v46, %v119_v39  ;;  %v142_v59 = vrot.slane %v141_v49, 2 }
  0xbd   :  { %v201_v57 = vadd.f32 %v200_v48, %v121_v40  ;;  %v172_v62 = vrot.slane %v171_v51, 2  ;;  %v178_v2 = vrot.slane %v177_v52, 2  ;;  %v213_v7 = vadd.f32 %v212_v54, %v123_v14 }
  0xbe   :  { %v184_v6 = vrot.slane %v183_v53, 2  ;;  %v254_v9 = vrot.slane %v1098_v38, 4  ;;  %v190_v10 = vrot.slane %v189_v56, 2  ;;  %v143_v1 = vadd.f32 %v142_v59, %v141_v49 }
  0xbf   :  { %v202_v12 = vrot.slane %v201_v57, 2  ;;  %v272_v16 = vrot.slane %v1104_v45, 4  ;;  %v173_v17 = vadd.f32 %v172_v62, %v171_v51  ;;  %v179_v18 = vadd.f32 %v178_v2, %v177_v52 }
  0xc0   :  { %v214_v19 = vrot.slane %v213_v7, 2  ;;  %v1109_v24 = vadd.f32 %v184_v6, %v183_v53  ;;  %v144_v26 = vrot.slane %v143_v1, 1  ;;  %v248_v29 = vrot.slane %v129_v34, 4 }
  0xc1   :  { %v1111_v25 = vadd.f32 %v202_v12, %v201_v57  ;;  %v180_v31 = vrot.slane %v179_v18, 1  ;;  %v153_v14 = vadd.f32 %v152_v28, %v1066_v5  ;;  %v191_v35 = vadd.f32 %v190_v10, %v189_v56 }
  0xc2   :  { %v215_v33 = vadd.f32 %v214_v19, %v213_v7  ;;  %v145_v36 = vadd.f32 %v144_v26, %v143_v1  ;;  %v249_v39 = vadd.f32 %v248_v29, %v129_v34  ;;  %v224_v40 = vrot.slane %v1076_v15, 4 }
  0xc3   :  { %v260_v42 = vrot.slane %v131_v41, 4  ;;  %v181_v43 = vadd.f32 %v180_v31, %v179_v18  ;;  %v154_v46 = vrot.slane %v153_v14, 2  ;;  %v192_v48 = vrot.slane %v191_v35, 1 }
  0xc4   :  { %v216_v44 = vrot.slane %v215_v33, 1  ;;  %v250_v49 = vrot.slane %v249_v39, 2  ;;  %v225_v51 = vadd.f32 %v224_v40, %v1076_v15  ;;  %v136_v53 = vrot.slane %v1083_v27, 2 }
  0xc5   :  { %v261_v52 = vadd.f32 %v260_v42, %v131_v41  ;;  %v411_v57 = vsel %vm405_vm0, %v181_v43, %v145_v36  ;;  %v155_v5 = vadd.f32 %v154_v46, %v153_v14  ;;  %v193_v28 = vadd.f32 %v192_v48, %v191_v35 }
  0xc6   :  { %v217_v54 = vadd.f32 %v216_v44, %v215_v33  ;;  %v251_v56 = vadd.f32 %v250_v49, %v249_v39  ;;  %v226_v34 = vrot.slane %v225_v51, 2  ;;  %v137_v62 = vadd.f32 %v136_v53, %v1083_v27  ;;  %v61_v53 = vld [vmem:[#allocation2 + $0x20] sm:$0xff] }
  0xc7   :  { %v262_v59 = vrot.slane %v261_v52, 2  ;;  %v156_v6 = vrot.slane %v155_v5, 1  ;;  %v174_v7 = vrot.slane %v173_v17, 1  ;;  %v207_v15 = vadd.f32 %v206_v21, %v1046_v58 }
  0xc8   :  { %v412_v2 = vsel %vm407_vm1, %v217_v54, %v411_v57  ;;  %v252_v41 = vrot.slane %v251_v56, 1  ;;  %v227_v10 = vadd.f32 %v226_v34, %v225_v51  ;;  %v138_v1 = vrot.slane %v137_v62, 1 }
  0xc9   :  { %v263_v12 = vadd.f32 %v262_v59, %v261_v52  ;;  %v157_v18 = vadd.f32 %v156_v6, %v155_v5  ;;  %v175_v19 = vadd.f32 %v174_v7, %v173_v17  ;;  %v208_v26 = vrot.slane %v207_v15, 2  ;;  %v67_v17 = vld [vmem:[#allocation2 + $0x50] sm:$0xff] }
  0xca   :  { %v243_v29 = vadd.f32 %v242_v55, %v1087_v30  ;;  %v253_v31 = vadd.f32 %v252_v41, %v251_v56  ;;  %v228_v33 = vrot.slane %v227_v10, 1  ;;  %v139_v14 = vadd.f32 %v138_v1, %v137_v62  ;;  %v344_v62 = vld [vmem:[#allocation7 + $0x210] sm:$0xff]  ;;  %v73_v41 = vld [vmem:[#allocation2 + $0x80] sm:$0xff] }
  0xcb   :  { %v264_v27 = vrot.slane %v263_v12, 1  ;;  %v417_v35 = vsel %vm405_vm0, %v193_v28, %v157_v18  ;;  %v209_v36 = vadd.f32 %v208_v26, %v207_v15  ;;  %v148_v40 = vrot.slane %v1090_v32, 2  ;;  %v362_v1 = vld [vmem:[#allocation7 + $0x2a0] sm:$0xff]  ;;  %v363_v18 = vld [vmem:[#allocation7 + $0x2a8] sm:$0xff] }
  0xcc   :  { %v244_v39 = vrot.slane %v243_v29, 2  ;;  %v413_v58 = vsel %vm409_vm2, %v253_v31, %v412_v2  ;;  %v229_v21 = vadd.f32 %v228_v33, %v227_v10  ;;  %v406_v43 = vsel %vm405_vm0, %v175_v19, %v139_v14  ;;  %v345_v2 = vld [vmem:[#allocation7 + $0x218] sm:$0xff]  ;;  %v79_v31 = vld [vmem:[#allocation2 + $0xb0] sm:$0xff]  ;;  %v346_v14 = vld [vmem:[#allocation7 + $0x220] sm:$0xff] }
  0xcd   :  { %v265_v42 = vadd.f32 %v264_v27, %v263_v12  ;;  %496 = vmatprep.mubr.f32.mxu0 %v413_v58  ;;  %v210_v44 = vrot.slane %v209_v36, 1  ;;  %v149_v55 = vadd.f32 %v148_v40, %v1090_v32  ;;  %v186_v46 = vrot.slane %v1109_v24, 1 }
  0xce   :  { %v245_v30 = vadd.f32 %v244_v39, %v243_v29  ;;  %v418_v48 = vsel %vm407_vm1, %v229_v21, %v417_v35  ;;  %v219_v49 = vadd.f32 %v218_v22, %v1054_v63  ;;  %v255_v51 = vadd.f32 %v254_v9, %v1098_v38 }
  0xcf   :  { %v166_v52 = vrot.slane %v1095_v37, 2  ;;  %v419_v54 = vsel %vm409_vm2, %v265_v42, %v418_v48  ;;  %v211_v57 = vadd.f32 %v210_v44, %v209_v36  ;;  %v150_v32 = vrot.slane %v149_v55, 1  ;;  %v349_v48 = vld [vmem:[#allocation7 + $0x238] sm:$0xff] }
  0xd0   :  { %v246_v5 = vrot.slane %v245_v30, 1  ;;  %v120_v28 = vmul.f32 %v1070_v11, %v67_v17  ;;  %566 = vmatprep.mubr.f32.mxu1 %v419_v54  ;;  %v220_v56 = vrot.slane %v219_v49, 2  ;;  %v256_v34 = vrot.slane %v255_v51, 2 }
  0xd1   :  { %v167_v59 = vadd.f32 %v166_v52, %v1095_v37  ;;  %v408_v22 = vsel %vm407_vm1, %v211_v57, %v406_v43  ;;  %v187_v38 = vadd.f32 %v186_v46, %v1109_v24  ;;  %v204_v9 = vrot.slane %v1111_v25, 1  ;;  %v348_v46 = vld [vmem:[#allocation7 + $0x230] sm:$0xff]  ;;  %v367_v52 = vld [vmem:[#allocation7 + $0x2c8] sm:$0xff] }
  0xd2   :  { %v247_v63 = vadd.f32 %v246_v5, %v245_v30  ;;  %v114_v6 = vmul.f32 %v1042_v50, %v61_v53  ;;  %v221_v7 = vadd.f32 %v220_v56, %v219_v49  ;;  %v257_v15 = vadd.f32 %v256_v34, %v255_v51  ;;  %v366_v51 = vld [vmem:[#allocation7 + $0x2c0] sm:$0xff] }
  0xd3   :  { %v237_v11 = vadd.f32 %v236_v23, %v1057_v0  ;;  %v151_v10 = vadd.f32 %v150_v32, %v149_v55  ;;  %v168_v12 = vrot.slane %v167_v59, 1  ;;  %v273_v24 = vadd.f32 %v272_v16, %v1104_v45  ;;  %v347_v45 = vld [vmem:[#allocation7 + $0x228] sm:$0xff]  ;;  %v350_v34 = vld [vmem:[#allocation7 + $0x240] sm:$0xff] }
  0xd4   :  { %v410_v37 = vsel %vm409_vm2, %v247_v63, %v408_v22  ;;  %v222_v19 = vrot.slane %v221_v7, 1  ;;  %v258_v50 = vrot.slane %v257_v15, 1  ;;  %v836_v29 = vpack.c.bf16 %v345_v2, %v344_v62  ;;  %v368_v22 = vld [vmem:[#allocation7 + $0x2d0] sm:$0xff] }
  0xd5   :  { %497 = vmatmul.mubr.f32.vlgmr.msra.gmra.mrb[0].mxu0 %v410_v37  ;;  %v238_v26 = vrot.slane %v237_v11, 2  ;;  %v194_v33 = vrot.slane %v120_v28, 4  ;;  %v414_v0 = vsel %vm405_vm0, %v187_v38, %v151_v10  ;;  %v205_v23 = vadd.f32 %v204_v9, %v1111_v25  ;;  %v369_v38 = vld [vmem:[#allocation7 + $0x2d8] sm:$0xff]  ;;  %v371_v37 = vld [vmem:[#allocation7 + $0x2e8] sm:$0xff] }
  0xd6   :  { %833 = vmatpush3.bf16.msra.mxu0 %v832_v13  ;;  %v274_v27 = vrot.slane %v273_v24, 2  ;;  %v126_v16 = vmul.f32 %v1040_v47, %v73_v41  ;;  %v223_v35 = vadd.f32 %v222_v19, %v221_v7  ;;  %v838_v39 = vpack.c.bf16 %v363_v18, %v362_v1  ;;  %v352_v7 = vld [vmem:[#allocation7 + $0x250] sm:$0xff]  ;;  %v370_v41 = vld [vmem:[#allocation7 + $0x2e0] sm:$0xff] }
  0xd7   :  { %v239_v36 = vadd.f32 %v238_v26, %v237_v11  ;;  %835 = vmatprep.subr.bf16.mxu0 %v834_v20  ;;  %v158_v40 = vrot.slane %v114_v6, 4  ;;  %v259_v58 = vadd.f32 %v258_v50, %v257_v15  ;;  %v169_v21 = vadd.f32 %v168_v12, %v167_v59  ;;  %v351_v59 = vld [vmem:[#allocation7 + $0x248] sm:$0xff]  ;;  %v353_v15 = vld [vmem:[#allocation7 + $0x258] sm:$0xff]  ;;  %v354_v19 = vld [vmem:[#allocation7 + $0x260] sm:$0xff] }
  0xd8   :  { %v275_v42 = vadd.f32 %v274_v27, %v273_v24  ;;  %v132_v13 = vmul.f32 %v1068_v8, %v79_v31  ;;  %v415_v25 = vsel %vm407_vm1, %v223_v35, %v414_v0  ;;  %v840_v17 = vpack.c.bf16 %v347_v45, %v346_v14  ;;  %v355_v50 = vld [vmem:[#allocation7 + $0x268] sm:$0xff]  ;;  %v373_v31 = vld [vmem:[#allocation7 + $0x2f8] sm:$0xff]  ;;  %v356_v45 = vld [vmem:[#allocation7 + $0x270] sm:$0xff] }
  0xd9   :  { %v240_v43 = vrot.slane %v239_v36, 1  ;;  %v195_v47 = vadd.f32 %v194_v33, %v120_v28  ;;  %v416_v44 = vsel %vm409_vm2, %v259_v58, %v415_v25  ;;  %v423_v3 = vsel %vm405_vm0, %v205_v23, %v169_v21 }
  0xda   :  { %v276_v30 = vrot.slane %v275_v42, 1  ;;  %837 = vmatpush3.bf16.msra.mxu0 %v836_v29  ;;  %v230_v4 = vrot.slane %v126_v16, 4  ;;  %567 = vmatmul.mubr.f32.vlgmr.msra.gmra.mrb[0].mxu1 %v416_v44  ;;  %v842_v55 = vpack.c.bf16 %v365_v61, %v364_v60  ;;  %v159_v49 = vadd.f32 %v158_v40, %v114_v6  ;;  %v372_v29 = vld [vmem:[#allocation7 + $0x2f0] sm:$0xff] }
  0xdb   :  { %v241_v20 = vadd.f32 %v240_v43, %v239_v36  ;;  %839 = vmatprep.subr.bf16.mxu0 %v838_v39  ;;  %v266_v54 = vrot.slane %v132_v13, 4  ;;  %v196_v57 = vrot.slane %v195_v47, 2  ;;  %v844_v32 = vpack.c.bf16 %v349_v48, %v348_v46 }
  0xdc   :  { %v277_v8 = vadd.f32 %v276_v30, %v275_v42  ;;  %v231_v28 = vadd.f32 %v230_v4, %v126_v16  ;;  %v846_v56 = vpack.c.bf16 %v367_v52, %v366_v51  ;;  %v160_v63 = vrot.slane %v159_v49, 2  ;;  %v357_v16 = vld [vmem:[#allocation7 + $0x278] sm:$0xff] }
  0xdd   :  { %v424_v53 = vsel %vm407_vm1, %v241_v20, %v423_v3  ;;  %v267_v9 = vadd.f32 %v266_v54, %v132_v13  ;;  %v197_v62 = vadd.f32 %v196_v57, %v195_v47  ;;  %v848_v2 = vpack.c.bf16 %v351_v59, %v350_v34 }
  0xde   :  { %v425_v5 = vsel %vm409_vm2, %v277_v8, %v424_v53  ;;  %841 = vmatpush3.bf16.msra.mxu0 %v840_v17  ;;  %v850_v6 = vpack.c.bf16 %v369_v38, %v368_v22  ;;  %v232_v11 = vrot.slane %v231_v28, 2  ;;  %v161_v10 = vadd.f32 %v160_v63, %v159_v49  ;;  %v660_v17 = vld [vmem:[%s1188_s3] ss:$0 sm:$0xff] }
  0xdf   :  { %636 = vmatprep.mubr.f32.mxu0 %v425_v5  ;;  %843 = vmatprep.subr.bf16.mxu0 %v842_v55  ;;  %v852_v12 = vpack.c.bf16 %v353_v15, %v352_v7  ;;  %v198_v24 = vrot.slane %v197_v62, 1  ;;  %v268_v1 = vrot.slane %v267_v9, 2  ;;  %v854_v18 = vpack.c.bf16 %v371_v37, %v370_v41 }
  0xe0   :  { %v233_v26 = vadd.f32 %v232_v11, %v231_v28  ;;  %v162_v33 = vrot.slane %v161_v10, 1  ;;  %v856_v0 = vpack.c.bf16 %v355_v50, %v354_v19  ;;  %v858_v14 = vpack.c.bf16 %v373_v31, %v372_v29 }
  0xe1   :  { %v199_v23 = vadd.f32 %v198_v24, %v197_v62  ;;  %v269_v27 = vadd.f32 %v268_v1, %v267_v9  ;;  %v860_v39 = vpack.c.bf16 %v357_v16, %v356_v45 }
  0xe2   :  { %845 = vmatpush3.bf16.msra.mxu0 %v844_v32  ;;  %v234_v35 = vrot.slane %v233_v26, 1  ;;  %v163_v36 = vadd.f32 %v162_v33, %v161_v10 }
  0xe3   :  { %847 = vmatprep.subr.bf16.mxu0 %v846_v56  ;;  %v270_v40 = vrot.slane %v269_v27, 1 }
  0xe4   :  { %v420_v58 = vsel %vm405_vm0, %v199_v23, %v163_v36  ;;  %v235_v21 = vadd.f32 %v234_v35, %v233_v26 }
  0xe5   :  { %v271_v60 = vadd.f32 %v270_v40, %v269_v27 }
  0xe6   :  { %849 = vmatpush3.bf16.msra.mxu0 %v848_v2  ;;  %v421_v42 = vsel %vm407_vm1, %v235_v21, %v420_v58 }
  0xe7   :  { %851 = vmatprep.subr.bf16.mxu0 %v850_v6  ;;  %v422_v61 = vsel %vm409_vm2, %v271_v60, %v421_v42 }
  0xea   :  { %853 = vmatpush3.bf16.msra.mxu0 %v852_v12 }
  0xeb   :  { %855 = vmatprep.subr.bf16.mxu0 %v854_v18 }
  0xee   :  { %857 = vmatpush3.bf16.msra.mxu0 %v856_v0 }
  0xef   :  { %859 = vmatprep.subr.bf16.mxu0 %v858_v14 }
  0xf2   :  { %861 = vmatpush3.bf16.msra.mxu0 %v860_v39 }
  0xf5   :  { %637 = vmatmul.mubr.f32.vlgmr.msra.gmra.mrb[2].mxu0 %v422_v61 }
 0x1a8   :  { %v693_v13 = vpop.f32.mrb[0].mxu0 }
 0x1a9   :  { %v694_v25 = vpop.f32.mrb[1].mxu0 }
 0x1aa   :  { %v695_v43 = vadd.f32 %v694_v25, %v693_v13 }
 0x1ac   :  { %v499_v44 = vadd.f32 %v695_v43, %v660_v17 }
 0x1ad   :  { %v728_v47 = vpop.f32.mrb[0].mxu1 }
 0x1ae   :  { %v729_v30 = vpop.f32.mrb[1].mxu1 }
 0x1af   :  { %v730_v3 = vadd.f32 %v729_v30, %v728_v47 }
 0x1b1   :  { %v569_v4 = vadd.f32 %v730_v3, %v499_v44 }
 0x1c8   :  { %v763_v20 = vpop.f32.mrb[2].mxu0 }
 0x1c9   :  { %v764_v55 = vpop.f32.mrb[3].mxu0 }
 0x1ca   :  { %v765_v46 = vadd.f32 %v764_v55, %v763_v20 }
 0x1cc   :  { %v639_v48 = vadd.f32 %v765_v46, %v569_v4 }
 0x1ce   :  { %v642_v49 = vmax.f32 %v639_v48, 0.0 }
 0x1d0   :  { %643 = vst [vmem:[#allocation8] sm:$0xf] %v642_v49 }
 0x1d1   :  { %947 = shalt.err (!%p944_p0)
}
 0x1d2   :  { %s948_s6 = scalar_lea.hbm %s1189_s4, 64 }
 0x1d3   :  { %p949_p1 = scmp.ne.s32.totalorder %s1189_s4, %s948_s6  ;;  %p952_p2 = scmp.lt.u32.totalorder %s948_s6, %s1189_s4 }
 0x1d5   :  { %p954_p3 = pnand %p952_p2, %p949_p1 }
 0x1d7   :  { %957 = shalt.err (!%p954_p3)
}
 0x1d8   :  { %653 = dma.vmem_to_hbm [thread:$0]  %s651_s29, 64, %s1189_s4, [#allocation4]  }
 0x1d9   :  { %962 = dma.done.wait [#allocation4], 64  }
 0x1da   :  { %963 = vsyncadd [#allocation4], 4294967232 }
 0x1db   :  { %657 = vsyncpa [#allocation3], 1 }
 0x1dc   :  { %658 = vsyncpa [#allocation6], 1 }
 0x1dd   :  { %659 = vsyncpa [#allocation4], 1 }

</bundles_post_ra>
